<compile_context>
chip_gen: v6e
topology: v6e:2x2x1
jax: 0.10.0
libtpu: 0.0.40
codegen_flags: <defaults>
</compile_context>

<pallas_src>
import math

import jax
import jax.numpy as jnp
from jax import lax
from jax.experimental import pallas as pl
from jax.experimental.pallas import tpu as pltpu


def _make_kernel(d_k: float, batch_block: int, d_model: int, compute_dtype):
    inv_scale = 1.0 / math.sqrt(d_k)

    def kernel(w1_ref, w2_ref, gcn_ref, src_ref, ast_ref, out_ref):
        # Augmented weights: [A, A+1] / [A, S+1]; activations carry a ones row,
        # so the bias is applied inside the MXU accumulation for free.
        w1 = w1_ref[...].astype(compute_dtype)
        w2 = w2_ref[...].astype(compute_dtype)
        gcn = gcn_ref[...].astype(compute_dtype)    # [A+1, BB*D]
        src = src_ref[...].astype(compute_dtype)    # [S+1, BB*D]

        # Batched 1x1 convs: one wide MXU matmul each (N = batch_block * D).
        q_all = jnp.dot(w1, gcn, preferred_element_type=jnp.float32)    # [A, BB*D]
        kv_all = jnp.dot(w2, src, preferred_element_type=jnp.float32)   # [A, BB*D]

        ctx_parts = []
        for b in range(batch_block):   # static unroll; batch_block is small
            lo = b * d_model
            q = q_all[:, lo:lo + d_model].astype(compute_dtype)     # [A, D]
            kv = kv_all[:, lo:lo + d_model].astype(compute_dtype)   # [A, D]

            # scores = q @ kv^T without materializing the transpose.
            scores = lax.dot_general(
                q, kv,
                dimension_numbers=(((1,), (1,)), ((), ())),
                preferred_element_type=jnp.float32) * inv_scale      # [A, A]

            m = jnp.max(scores, axis=-1, keepdims=True)
            p = jnp.exp(scores - m)
            # Exact reciprocal keeps parity with the f32 reference; switch to
            # approx=True (EUP vrcp) when the tolerance budget allows.
            attn = p * pl.reciprocal(jnp.sum(p, axis=-1, keepdims=True))

            ctx_parts.append(
                jnp.dot(attn.astype(compute_dtype), kv,
                        preferred_element_type=jnp.float32))          # [A, D]

        ctx_all = ctx_parts[0] if batch_block == 1 else jnp.concatenate(ctx_parts, axis=1)
        # Single wide store of the whole batch block (residual add included).
        out_ref[...] = (ctx_all + ast_ref[...]).astype(out_ref.dtype)

    return kernel


def multi_model_forward(params, gcn_embed, src_embed, ast_embed, d_k,
                        *, batch_block=None, compute_dtype=jnp.float32):
    """params = dict(w1 [A,A], b1 [A,1], w2 [A,S], b2 [A,1]).

    gcn_embed : [B, A, D], src_embed : [B, S, D], ast_embed : [B, A, D]
    Returns [B, A, D].
    """
    B, A, D = gcn_embed.shape
    S = src_embed.shape[1]

    if batch_block is None:
        batch_block = B                      # everything in one grid step
    assert B % batch_block == 0, "batch_block must divide B"
    num_blocks = B // batch_block
    BD = batch_block * D
    if num_blocks > 1:
        # Sub-batch lane blocks must satisfy the (8, 128) BlockSpec rule.
        assert BD % 128 == 0, "batch_block * d_model must be a multiple of 128 when gridding"

    # Wrapper-side layout plumbing: [B, X, D] -> [X, B*D] slabs so the batch
    # dimension widens the matmul N dimension and the output is one wide slab.
    def to_slab(x):
        return jnp.transpose(x, (1, 0, 2)).reshape(x.shape[1], B * D)

    gcn_all = to_slab(gcn_embed)             # [A, B*D]
    src_all = to_slab(src_embed)             # [S, B*D]
    ast_all = to_slab(ast_embed)             # [A, B*D]

    # Fold the conv biases into the weights (augmented matmul).
    w1_aug = jnp.concatenate([params["w1"], params["b1"]], axis=1)   # [A, A+1]
    w2_aug = jnp.concatenate([params["w2"], params["b2"]], axis=1)   # [A, S+1]
    ones_row = jnp.ones((1, B * D), gcn_all.dtype)
    gcn_aug = jnp.concatenate([gcn_all, ones_row], axis=0)           # [A+1, B*D]
    src_aug = jnp.concatenate([src_all, ones_row], axis=0)           # [S+1, B*D]

    kernel = _make_kernel(d_k, batch_block, D, compute_dtype)

    out_slab = pl.pallas_call(
        kernel,
        out_shape=jax.ShapeDtypeStruct((A, B * D), jnp.float32),
        grid_spec=pltpu.PrefetchScalarGridSpec(
            num_scalar_prefetch=0,
            grid=(num_blocks,),
            in_specs=[
                pl.BlockSpec((A, A + 1), lambda i: (0, 0)),    # augmented conv1 weight
                pl.BlockSpec((A, S + 1), lambda i: (0, 0)),    # augmented conv2 weight
                pl.BlockSpec((A + 1, BD), lambda i: (0, i)),   # gcn slab (+ ones row)
                pl.BlockSpec((S + 1, BD), lambda i: (0, i)),   # src slab (+ ones row)
                pl.BlockSpec((A, BD), lambda i: (0, i)),       # AST slab (residual)
            ],
            out_specs=pl.BlockSpec((A, BD), lambda i: (0, i)),
        ),
        compiler_params=pltpu.CompilerParams(
            dimension_semantics=("parallel",)),                # batch-block axis
    )(w1_aug, w2_aug, gcn_aug, src_aug, ast_all)

    # [A, B*D] -> [B, A, D]
    return jnp.transpose(out_slab.reshape(A, B, D), (1, 0, 2))


def reference_forward(params, gcn_embed, src_embed, ast_embed, d_k):
    """Pure-JAX reference mirroring the PyTorch module."""
    q = jnp.einsum("oi,bil->bol", params["w1"], gcn_embed) + params["b1"][None, :, :]
    kv = jnp.einsum("oi,bil->bol", params["w2"], src_embed) + params["b2"][None, :, :]
    scores = jnp.einsum("bqd,bkd->bqk", q, kv) / math.sqrt(d_k)
    attn = jax.nn.softmax(scores, axis=-1)
    ctx = jnp.einsum("bqk,bkd->bqd", attn, kv)
    return ctx + ast_embed


if __name__ == "__main__":
    # Small shapes consistent with the module.
    B = 2                 # batch
    max_ast_node = 16     # A : conv1 in/out channels, conv2 out channels, len_q/len_k
    src_max_length = 8    # S : conv2 in channels
    d_model = 32          # L : Conv1d spatial length == attention feature dim
    d_k = 32              # scaling factor of the attention

    key = jax.random.PRNGKey(0)
    k1, k2, k3, k4, k5, k6, k7 = jax.random.split(key, 7)

    # Deterministic parameter init (Conv1d weight [out, in, 1] squeezed to [out, in]).
    params = {
        "w1": 0.1 * jax.random.normal(k1, (max_ast_node, max_ast_node), jnp.float32),
        "b1": 0.1 * jax.random.normal(k2, (max_ast_node, 1), jnp.float32),
        "w2": 0.1 * jax.random.normal(k3, (max_ast_node, src_max_length), jnp.float32),
        "b2": 0.1 * jax.random.normal(k4, (max_ast_node, 1), jnp.float32),
    }

    gcn_embed = jax.random.normal(k5, (B, max_ast_node, d_model), jnp.float32)
    src_embed = jax.random.normal(k6, (B, src_max_length, d_model), jnp.float32)
    ast_embed = jax.random.normal(k7, (B, max_ast_node, d_model), jnp.float32)

    out = multi_model_forward(params, gcn_embed, src_embed, ast_embed, d_k)
    out = jax.block_until_ready(out)

    ref = reference_forward(params, gcn_embed, src_embed, ast_embed, d_k)
    assert out.shape == (B, max_ast_node, d_model)
    assert jnp.allclose(out, ref, atol=1e-4, rtol=1e-4), "mismatch vs reference"

    print("KERNEL_OK")
</pallas_src>

<mosaic_0001>
module attributes {stable_mosaic.version = 11 : i64} {
  func.func @kernel(%arg0: i32, %arg1: memref<16x17xf32, #tpu.memory_space<vmem>>, %arg2: memref<16x9xf32, #tpu.memory_space<vmem>>, %arg3: memref<17x64xf32, #tpu.memory_space<vmem>>, %arg4: memref<9x64xf32, #tpu.memory_space<vmem>>, %arg5: memref<16x64xf32, #tpu.memory_space<vmem>>, %arg6: memref<16x64xf32, #tpu.memory_space<vmem>>) attributes {dimension_semantics = [#tpu.dimension_semantics<parallel>], iteration_bounds = array<i64: 1>, scalar_prefetch = 0 : i64, scratch_operands = 0 : i64, tpu.core_type = #tpu.core_type<tc>, window_params = [{pipeline_mode = #tpu.pipeline_mode<synchronous>, transform_indices = @transform_0, window_bounds = array<i64: 16, 17>}, {pipeline_mode = #tpu.pipeline_mode<synchronous>, transform_indices = @transform_1, window_bounds = array<i64: 16, 9>}, {transform_indices = @transform_2, window_bounds = array<i64: 17, 64>}, {transform_indices = @transform_3, window_bounds = array<i64: 9, 64>}, {transform_indices = @transform_4, window_bounds = array<i64: 16, 64>}, {transform_indices = @transform_5, window_bounds = array<i64: 16, 64>}]} {
    %c0 = arith.constant 0 : index
    %c0_0 = arith.constant 0 : index
    %0 = vector.load %arg1[%c0, %c0_0] : memref<16x17xf32, #tpu.memory_space<vmem>>, vector<16x17xf32>
    %c0_1 = arith.constant 0 : index
    %c0_2 = arith.constant 0 : index
    %1 = vector.load %arg2[%c0_1, %c0_2] : memref<16x9xf32, #tpu.memory_space<vmem>>, vector<16x9xf32>
    %c0_3 = arith.constant 0 : index
    %c0_4 = arith.constant 0 : index
    %2 = vector.load %arg3[%c0_3, %c0_4] : memref<17x64xf32, #tpu.memory_space<vmem>>, vector<17x64xf32>
    %c0_5 = arith.constant 0 : index
    %c0_6 = arith.constant 0 : index
    %3 = vector.load %arg4[%c0_5, %c0_6] : memref<9x64xf32, #tpu.memory_space<vmem>>, vector<9x64xf32>
    %cst = arith.constant dense<0.000000e+00> : vector<16x64xf32>
    %4 = tpu.matmul %0, %2, %cst {dimension_numbers = #tpu.dot_dimension_numbers<[1], [0], [0], [1], [0, 0, 1, 1], [], []>} : vector<16x17xf32>, vector<17x64xf32>, vector<16x64xf32> -> vector<16x64xf32>
    %cst_7 = arith.constant dense<0.000000e+00> : vector<16x64xf32>
    %5 = tpu.matmul %1, %3, %cst_7 {dimension_numbers = #tpu.dot_dimension_numbers<[1], [0], [0], [1], [0, 0, 1, 1], [], []>} : vector<16x9xf32>, vector<9x64xf32>, vector<16x64xf32> -> vector<16x64xf32>
    %6 = vector.extract_strided_slice %4 {offsets = [0, 0], sizes = [16, 32], strides = [1, 1]} : vector<16x64xf32> to vector<16x32xf32>
    %7 = vector.extract_strided_slice %5 {offsets = [0, 0], sizes = [16, 32], strides = [1, 1]} : vector<16x64xf32> to vector<16x32xf32>
    %cst_8 = arith.constant dense<0.000000e+00> : vector<16x16xf32>
    %8 = tpu.matmul %6, %7, %cst_8 {dimension_numbers = #tpu.dot_dimension_numbers<[1], [1], [0], [0], [0, 0, 1, 0], [], []>} : vector<16x32xf32>, vector<16x32xf32>, vector<16x16xf32> -> vector<16x16xf32>
    %cst_9 = arith.constant 0.176776692 : f32
    %9 = vector.broadcast %cst_9 : f32 to vector<16x16xf32>
    %10 = arith.mulf %8, %9 : vector<16x16xf32>
    %cst_10 = arith.constant dense<0xFF800000> : vector<16xf32>
    %11 = vector.multi_reduction <maximumf>, %10, %cst_10 [1] : vector<16x16xf32> to vector<16xf32>
    %12 = vector.shape_cast %11 : vector<16xf32> to vector<16x1xf32>
    %13 = vector.broadcast %12 : vector<16x1xf32> to vector<16x16xf32>
    %14 = arith.subf %10, %13 : vector<16x16xf32>
    %15 = math.exp %14 : vector<16x16xf32>
    %cst_11 = arith.constant dense<0.000000e+00> : vector<16xf32>
    %16 = vector.multi_reduction <add>, %15, %cst_11 [1] : vector<16x16xf32> to vector<16xf32>
    %17 = vector.shape_cast %16 : vector<16xf32> to vector<16x1xf32>
    %18 = tpu.reciprocal %17 : vector<16x1xf32> -> vector<16x1xf32>
    %19 = vector.broadcast %18 : vector<16x1xf32> to vector<16x16xf32>
    %20 = arith.mulf %15, %19 : vector<16x16xf32>
    %cst_12 = arith.constant dense<0.000000e+00> : vector<16x32xf32>
    %21 = tpu.matmul %20, %7, %cst_12 {dimension_numbers = #tpu.dot_dimension_numbers<[1], [0], [0], [1], [0, 0, 1, 1], [], []>} : vector<16x16xf32>, vector<16x32xf32>, vector<16x32xf32> -> vector<16x32xf32>
    %22 = vector.extract_strided_slice %4 {offsets = [0, 32], sizes = [16, 32], strides = [1, 1]} : vector<16x64xf32> to vector<16x32xf32>
    %23 = vector.extract_strided_slice %5 {offsets = [0, 32], sizes = [16, 32], strides = [1, 1]} : vector<16x64xf32> to vector<16x32xf32>
    %cst_13 = arith.constant dense<0.000000e+00> : vector<16x16xf32>
    %24 = tpu.matmul %22, %23, %cst_13 {dimension_numbers = #tpu.dot_dimension_numbers<[1], [1], [0], [0], [0, 0, 1, 0], [], []>} : vector<16x32xf32>, vector<16x32xf32>, vector<16x16xf32> -> vector<16x16xf32>
    %cst_14 = arith.constant 0.176776692 : f32
    %25 = vector.broadcast %cst_14 : f32 to vector<16x16xf32>
    %26 = arith.mulf %24, %25 : vector<16x16xf32>
    %cst_15 = arith.constant dense<0xFF800000> : vector<16xf32>
    %27 = vector.multi_reduction <maximumf>, %26, %cst_15 [1] : vector<16x16xf32> to vector<16xf32>
    %28 = vector.shape_cast %27 : vector<16xf32> to vector<16x1xf32>
    %29 = vector.broadcast %28 : vector<16x1xf32> to vector<16x16xf32>
    %30 = arith.subf %26, %29 : vector<16x16xf32>
    %31 = math.exp %30 : vector<16x16xf32>
    %cst_16 = arith.constant dense<0.000000e+00> : vector<16xf32>
    %32 = vector.multi_reduction <add>, %31, %cst_16 [1] : vector<16x16xf32> to vector<16xf32>
    %33 = vector.shape_cast %32 : vector<16xf32> to vector<16x1xf32>
    %34 = tpu.reciprocal %33 : vector<16x1xf32> -> vector<16x1xf32>
    %35 = vector.broadcast %34 : vector<16x1xf32> to vector<16x16xf32>
    %36 = arith.mulf %31, %35 : vector<16x16xf32>
    %cst_17 = arith.constant dense<0.000000e+00> : vector<16x32xf32>
    %37 = tpu.matmul %36, %23, %cst_17 {dimension_numbers = #tpu.dot_dimension_numbers<[1], [0], [0], [1], [0, 0, 1, 1], [], []>} : vector<16x16xf32>, vector<16x32xf32>, vector<16x32xf32> -> vector<16x32xf32>
    %38 = tpu.concatenate %21, %37 in 1 : vector<16x32xf32>, vector<16x32xf32> -> vector<16x64xf32>
    %c0_18 = arith.constant 0 : index
    %c0_19 = arith.constant 0 : index
    %39 = vector.load %arg5[%c0_18, %c0_19] : memref<16x64xf32, #tpu.memory_space<vmem>>, vector<16x64xf32>
    %40 = arith.addf %38, %39 : vector<16x64xf32>
    %c0_20 = arith.constant 0 : index
    %c0_21 = arith.constant 0 : index
    %41 = vector.load %arg6[%c0_20, %c0_21] : memref<16x64xf32, #tpu.memory_space<vmem>>, vector<16x64xf32>
    tpu.vector_store %arg6[%c0_20, %c0_21], %40 {strides = array<i32>} : memref<16x64xf32, #tpu.memory_space<vmem>>, vector<16x64xf32>,
    return
  }
  func.func @transform_0(%arg0: i32) -> (i32, i32) {
    %c0_i32 = arith.constant 0 : i32
    %c0_i32_0 = arith.constant 0 : i32
    %c0_i32_1 = arith.constant 0 : i32
    return %c0_i32, %c0_i32_0 : i32, i32
  }
  func.func @transform_1(%arg0: i32) -> (i32, i32) {
    %c0_i32 = arith.constant 0 : i32
    %c0_i32_0 = arith.constant 0 : i32
    %c0_i32_1 = arith.constant 0 : i32
    return %c0_i32, %c0_i32_0 : i32, i32
  }
  func.func @transform_2(%arg0: i32) -> (i32, i32) {
    %c0_i32 = arith.constant 0 : i32
    %c0_i32_0 = arith.constant 0 : i32
    return %c0_i32, %arg0 : i32, i32
  }
  func.func @transform_3(%arg0: i32) -> (i32, i32) {
    %c0_i32 = arith.constant 0 : i32
    %c0_i32_0 = arith.constant 0 : i32
    return %c0_i32, %arg0 : i32, i32
  }
  func.func @transform_4(%arg0: i32) -> (i32, i32) {
    %c0_i32 = arith.constant 0 : i32
    %c0_i32_0 = arith.constant 0 : i32
    return %c0_i32, %arg0 : i32, i32
  }
  func.func @transform_5(%arg0: i32) -> (i32, i32) {
    %c0_i32 = arith.constant 0 : i32
    %c0_i32_0 = arith.constant 0 : i32
    return %c0_i32, %arg0 : i32, i32
  }
}

</mosaic_0001>

<bundles_post_ra>
// kernel: tpu_custom_call.1
= control target key start
LH: loop header
LB: loop body
LE: loop exit
PB: predicated region body
PF: predicated region fallthrough
CT: control target
= control target key end

     0   :  { %10 = vsyncpa [#allocation3], 0  ;;  %s1044_s0 = inlined_call_operand.hbm [shape: f32[16,17], index: 0, kind: input, shape index: {}]   ;;  %s1045_s1 = inlined_call_operand.hbm [shape: f32[16,9], index: 1, kind: input, shape index: {}]   ;;  %s1046_s2 = inlined_call_operand.hbm [shape: f32[17,64], index: 2, kind: input, shape index: {}]   ;;  %s1047_s3 = inlined_call_operand.hbm [shape: f32[9,64], index: 3, kind: input, shape index: {}]   ;;  %s1048_s4 = inlined_call_operand.hbm [shape: f32[16,64], index: 4, kind: input, shape index: {}]   ;;  %s1049_s5 = inlined_call_operand.hbm [shape: f32[16,64], index: 5, kind: output, shape index: {}]  }
   0x1   :  { %11 = vsyncpa [#allocation6], 0 }
   0x2   :  { %12 = vsyncpa [#allocation9], 0 }
   0x3   :  { %13 = vsyncpa [#allocation4], 0  ;;  %s938_s18 = smov [#allocation5]   ;;  %s939_s20 = smov [#allocation8]  }
   0x4   :  { %s31_s19 = sshll.u32 %s938_s18, 4  ;;  %s55_s21 = sshll.u32 %s939_s20, 4  ;;  %s32_s19 = int_to_ptr.vmem [resolvable:$true] %s31_s19  ;;  %s56_s21 = int_to_ptr.vmem [resolvable:$true] %s55_s21 }
   0x5   :  { %s818_s22 = scalar_lea.vmem %s32_s19, 256  ;;  %p823_p1 = scmp.lt.s32.totalorder %s32_s19, %s32_s19 }
   0x6   :  { %p819_p0 = scmp.ne.s32.totalorder %s32_s19, %s818_s22  ;;  %p824_p2 = scmp.lt.s32.totalorder %s818_s22, %s818_s22 }
   0x8   :  { %p825_p3 = por %p824_p2, %p823_p1 }
   0xa   :  { %p826_p4 = pnand %p825_p3, %p819_p0 }
   0xc   :  { %829 = shalt.err (!%p826_p4)
}
   0xd   :  { %s940_s23 = smov 128   ;;  %s941_s24 = smov 8  }
   0xe   :  { %37 = dma.hbm_to_vmem [thread:$0]  %s1045_s1, 256, %s32_s19, [#allocation6], %s940_s23, %s940_s23, %s941_s24  }
   0xf   :  { %s838_s27 = scalar_lea.vmem %s56_s21, 256  ;;  %p843_p6 = scmp.lt.s32.totalorder %s56_s21, %s56_s21 }
  0x10   :  { %p839_p5 = scmp.ne.s32.totalorder %s56_s21, %s838_s27  ;;  %p844_p7 = scmp.lt.s32.totalorder %s838_s27, %s838_s27 }
  0x12   :  { %p845_p8 = por %p844_p7, %p843_p6 }
  0x14   :  { %p846_p9 = pnand %p845_p8, %p839_p5 }
  0x16   :  { %849 = shalt.err (!%p846_p9)
}
  0x17   :  { %61 = dma.hbm_to_vmem [thread:$0]  %s1047_s3, 256, %s56_s21, [#allocation9], %s940_s23, %s940_s23, %s941_s24  }
  0x18   :  { %s942_s30 = smov [#allocation2]   ;;  %s943_s7 = smov [#allocation7]  }
  0x19   :  { %s19_s6 = sshll.u32 %s942_s30, 4  ;;  %s43_s8 = sshll.u32 %s943_s7, 4  ;;  %s20_s6 = int_to_ptr.vmem [resolvable:$true] %s19_s6  ;;  %s44_s8 = int_to_ptr.vmem [resolvable:$true] %s43_s8 }
  0x1a   :  { %s858_s1 = scalar_lea.vmem %s20_s6, 256  ;;  %p863_p11 = scmp.lt.s32.totalorder %s20_s6, %s20_s6 }
  0x1b   :  { %p859_p10 = scmp.ne.s32.totalorder %s20_s6, %s858_s1  ;;  %p864_p12 = scmp.lt.s32.totalorder %s858_s1, %s858_s1 }
  0x1d   :  { %p865_p13 = por %p864_p12, %p863_p11 }
  0x1f   :  { %p866_p0 = pnand %p865_p13, %p859_p10 }
  0x21   :  { %869 = shalt.err (!%p866_p0)
}
  0x22   :  { %25 = dma.hbm_to_vmem [thread:$0]  %s1044_s0, 256, %s20_s6, [#allocation3], %s940_s23, %s940_s23, %s941_s24  }
  0x23   :  { %s878_s3 = scalar_lea.vmem %s44_s8, 384  ;;  %p883_p2 = scmp.lt.s32.totalorder %s44_s8, %s44_s8 }
  0x24   :  { %p879_p1 = scmp.ne.s32.totalorder %s44_s8, %s878_s3  ;;  %p884_p3 = scmp.lt.s32.totalorder %s878_s3, %s878_s3 }
  0x26   :  { %p885_p4 = por %p884_p3, %p883_p2 }
  0x28   :  { %p886_p5 = pnand %p885_p4, %p879_p1 }
  0x2a   :  { %889 = shalt.err (!%p886_p5)
}
  0x2b   :  { %49 = dma.hbm_to_vmem [thread:$0]  %s1046_s2, 384, %s44_s8, [#allocation6], %s940_s23, %s940_s23, %s941_s24  }
  0x2c   :  { %s944_s13 = smov [#allocation10]  }
  0x2d   :  { %s67_s14 = sshll.u32 %s944_s13, 4  ;;  %s68_s14 = int_to_ptr.vmem [resolvable:$true] %s67_s14 }
  0x2e   :  { %s898_s15 = scalar_lea.vmem %s68_s14, 256  ;;  %p903_p7 = scmp.lt.s32.totalorder %s68_s14, %s68_s14 }
  0x2f   :  { %p899_p6 = scmp.ne.s32.totalorder %s68_s14, %s898_s15  ;;  %p904_p8 = scmp.lt.s32.totalorder %s898_s15, %s898_s15 }
  0x31   :  { %p905_p9 = por %p904_p8, %p903_p7 }
  0x33   :  { %p906_p10 = pnand %p905_p9, %p899_p6 }
  0x35   :  { %909 = shalt.err (!%p906_p10)
}
  0x36   :  { %73 = dma.hbm_to_vmem [thread:$0]  %s1048_s4, 256, %s68_s14, [#allocation9], %s940_s23, %s940_s23, %s941_s24  }
  0x37   :  { %930 = dma.done.wait [#allocation3], 256  }
  0x38   :  { %931 = vsyncadd [#allocation3], 4294967040 }
  0x39   :  { %932 = dma.done.wait [#allocation6], 640  }
  0x3a   :  { %933 = vsyncadd [#allocation6], 4294966656 }
  0x3b   :  { %934 = dma.done.wait [#allocation9], 512  }
  0x3c   :  { %935 = vsyncadd [#allocation9], 4294966784  ;;  %vm105_vm0 = vcmask 1040384   ;;  %v97_v0 = vld [vmem:[#allocation8 + $0x8] sm:$0x1]  ;;  %v96_v2 = vld [vmem:[#allocation8] sm:$0xff] }
  0x3d   :  { %v95_v1 = vld [vmem:[#allocation7 + $0x10] sm:$0x1]  ;;  %749 = vmatprep.subr.msk.mxu1 %vm105_vm0, %v97_v0  ;;  %v94_v3 = vld [vmem:[#allocation7 + $0x8] sm:$0xff]  ;;  %vm184_vm1 = vcmask 72704   ;;  %v92_v5 = vld [vmem:[#allocation5 + $0x8] sm:$0xff]  ;;  %vm98_vm2 = vcmask 138240  }
  0x3e   :  { %740 = vmatprep.subr.msk.mxu0 %vm105_vm0, %v95_v1  ;;  %v91_v4 = vld [vmem:[#allocation5] sm:$0xff]  ;;  %750 = vmatpush3.msk.msra.mxu1 %vm105_vm0, %v97_v0  ;;  %v93_v6 = vld [vmem:[#allocation7] sm:$0xff]  ;;  %v90_v8 = vld [vmem:[#allocation2 + $0x8] sm:$0xff]  ;;  %vm269_vm3 = vcmask 261120   ;;  %s945_s2 = smov 96   ;;  %vm359_vm4 = vcmask 130048  }
  0x3f   :  { %741 = vmatpush3.msk.msra.mxu0 %vm105_vm0, %v95_v1  ;;  %751 = vmatprep.subr.mxu1 %v96_v2  ;;  %v89_v7 = vld [vmem:[#allocation2] sm:$0xff]  ;;  %s946_s4 = smov 32   ;;  %v672_v1 = vld [vmem:[#allocation10 + $0x8] sm:$0xff]  ;;  %vm675_vm5 = vcmask 523264   ;;  %s947_s17 = smov [#allocation11]  }
  0x40   :  { %742 = vmatprep.subr.mxu0 %v94_v3  ;;  %752 = vmatpush3.msra.mxu1 %v96_v2  ;;  %s683_s18 = sshll.u32 %s947_s17, 4  ;;  %s684_s18 = int_to_ptr.vmem [resolvable:$true] %s683_s18 }
  0x41   :  { %753 = vmatprep.mubr.msk.f32.mxu1 %vm184_vm1, %v91_v4  ;;  %743 = vmatpush3.msra.mxu0 %v94_v3  ;;  %v671_v4 = vld [vmem:[#allocation10] sm:$0xff]  ;;  %s910_s19 = scalar_lea.vmem %s684_s18, 256  ;;  %p915_p12 = scmp.lt.s32.totalorder %s684_s18, %s684_s18 }
  0x42   :  { %754 = vmatmul.mubr.msk.f32.vlgmr.msra.gmra.mxu1 %vm184_vm1, %v92_v5  ;;  %744 = vmatprep.subr.mxu0 %v93_v6  ;;  %p911_p11 = scmp.ne.s32.totalorder %s684_s18, %s910_s19  ;;  %p916_p13 = scmp.lt.s32.totalorder %s910_s19, %s910_s19 }
  0x43   :  { %746 = vmatprep.mubr.msk.f32.mxu0 %vm98_vm2, %v89_v7  ;;  %745 = vmatpush3.msra.mxu0 %v93_v6 }
  0x44   :  { %747 = vmatmul.mubr.msk.f32.vlgmr.msra.gmra.mxu0 %vm98_vm2, %v90_v8  ;;  %p917_p0 = por %p916_p13, %p915_p12 }
  0x46   :  { %p918_p1 = pnand %p917_p0, %p911_p11 }
 0x102   :  { %v755_v9 = vpop.f32.mrf.mxu1 }
 0x103   :  { %756 = vmatprep.subr.msk.mxu1 %vm269_vm3, %v755_v9  ;;  %763 = vmatprep.subr.mxu0 %v755_v9 }
 0x104   :  { %v260_v10 = vpop.f32.mrf.mxu1  ;;  %757 = vmatpush3.xpose.msk.msra.mxu1 %vm269_vm3, %v755_v9  ;;  %764 = vmatpush3.msra.mxu0 %v755_v9  ;;  %v748_v11 = vpop.f32.mrf.mxu0 }
 0x105   :  { %467 = vrot.lane.b32.xlu1 %v260_v10, %s945_s2  ;;  %758 = vmatprep.subr.msk.mxu1 %vm269_vm3, %v260_v10 }
 0x106   :  { %765 = vmatprep.subr.mxu0 %v260_v10  ;;  %v175_v12 = vpop.f32.mrf.mxu0 }
 0x107   :  { %766 = vmatpush3.msra.mxu0 %v260_v10  ;;  %760 = vmatprep.mubr.msk.f32.mxu1 %vm269_vm3, %v175_v12 }
 0x108   :  { %759 = vmatpush3.xpose.msk.msra.mxu1 %vm269_vm3, %v260_v10 }
 0x109   :  { %463 = vrot.lane.b32.xlu1 %v175_v12, %s945_s2 }
 0x10b   :  { %761 = vmatmul.mubr.msk.f32.vlgmr.msra.gmra.mxu1 %vm269_vm3, %v748_v11 }
 0x177   :  { %v468_v26 = vpop.permute.xlu1 %467 }
 0x17b   :  { %v464_v31 = vpop.permute.xlu1 %463 }
 0x1cb   :  { %v762_v13 = vpop.f32.mrf.mxu1 }
 0x1cc   :  { %v358_v16 = vmul.f32 0.17677669, %v762_v13 }
 0x1cd   :  { %v348_v14 = vpop.f32.mrf.mxu1 }
 0x1ce   :  { %v357_v15 = vmul.f32 0.17677669, %v348_v14  ;;  %v363_v18 = vsel %vm359_vm4, %v358_v16, -inf }
 0x1d0   :  { %v360_v17 = vsel %vm359_vm4, %v357_v15, -inf }
 0x1d1   :  { %361 = vmax.xlane.f32.xlu0 %v360_v17 }
 0x1d5   :  { %364 = vmax.xlane.f32.xlu0 %v363_v18 }
 0x1eb   :  { %469 = vrot.lane.b32.xlu0 %v755_v9, %s945_s2 }
 0x25a   :  { %v362_v19 = vpop.xlane.xlu0 %361 }
 0x25b   :  { %v366_v20 = vsub.f32 %v357_v15, %v362_v19 }
 0x25d   :  { %v368_v23 = vmul.f32 1.442695, %v366_v20 }
 0x25e   :  { %v365_v21 = vpop.xlane.xlu0 %364 }
 0x25f   :  { %v367_v22 = vsub.f32 %v358_v16, %v365_v21 }
 0x261   :  { %v370_v24 = vmul.f32 1.442695, %v367_v22 }
 0x262   :  { %v470_v25 = vpop.permute.xlu0 %469 }
 0x263   :  { %794 = vpow2.f32 %v370_v24  ;;  %770 = vmatprep.subr.msk.mxu0 %vm269_vm3, %v470_v25  ;;  %777 = vmatprep.subr.mxu1 %v470_v25 }
 0x264   :  { %778 = vmatpush3.msra.mxu1 %v470_v25  ;;  %796 = vpow2.f32 %v368_v23 }
 0x265   :  { %779 = vmatprep.subr.mxu1 %v468_v26 }
 0x266   :  { %780 = vmatpush3.msra.mxu1 %v468_v26 }
 0x270   :  { %v795_v27 = vpop.eup %794 }
 0x271   :  { %v375_v28 = vsel %vm359_vm4, %v795_v27, 0.0  ;;  %v797_v29 = vpop.eup %796 }
 0x272   :  { %376 = vadd.xlane.f32.xlu1 %v375_v28  ;;  %v372_v30 = vsel %vm359_vm4, %v797_v29, 0.0 }
 0x276   :  { %373 = vadd.xlane.f32.xlu1 %v372_v30 }
 0x287   :  { %465 = vrot.lane.b32.xlu1 %v748_v11, %s945_s2 }
 0x2fb   :  { %v377_v32 = vpop.xlane.xlu1 %376 }
 0x2fc   :  { %798 = vrcp.f32 %v377_v32 }
 0x2ff   :  { %v374_v33 = vpop.xlane.xlu1 %373 }
 0x300   :  { %800 = vrcp.f32 %v374_v33 }
 0x303   :  { %v466_v38 = vpop.permute.xlu1 %465 }
 0x309   :  { %v799_v34 = vpop.eup %798 }
 0x30a   :  { %v381_v37 = vmul.f32 %v799_v34, %v795_v27 }
 0x30d   :  { %v801_v35 = vpop.eup %800 }
 0x30e   :  { %v380_v36 = vmul.f32 %v801_v35, %v797_v29 }
 0x310   :  { %767 = vmatprep.mubr.msk.f32.mxu0 %vm359_vm4, %v380_v36 }
 0x311   :  { %768 = vmatmul.mubr.msk.f32.vlgmr.msra.gmra.mxu0 %vm359_vm4, %v381_v37 }
 0x312   :  { %771 = vmatpush3.xpose.msk.msra.mxu0 %vm269_vm3, %v470_v25  ;;  %774 = vmatprep.mubr.msk.f32.mxu0 %vm269_vm3, %v464_v31 }
 0x313   :  { %772 = vmatprep.subr.msk.mxu0 %vm269_vm3, %v468_v26 }
 0x316   :  { %773 = vmatpush3.xpose.msk.msra.mxu0 %vm269_vm3, %v468_v26 }
 0x319   :  { %775 = vmatmul.mubr.msk.f32.vlgmr.msra.gmra.mxu0 %vm269_vm3, %v466_v38 }
 0x3d1   :  { %v769_v39 = vpop.f32.mrf.mxu0 }
 0x3d3   :  { %v454_v40 = vpop.f32.mrf.mxu0 }
 0x3d9   :  { %v776_v41 = vpop.f32.mrf.mxu0 }
 0x3da   :  { %v555_v42 = vmul.f32 0.17677669, %v776_v41 }
 0x3db   :  { %v545_v43 = vpop.f32.mrf.mxu0 }
 0x3dc   :  { %v554_v44 = vmul.f32 0.17677669, %v545_v43  ;;  %v559_v45 = vsel %vm359_vm4, %v555_v42, -inf }
 0x3dd   :  { %560 = vmax.xlane.f32.xlu1 %v559_v45 }
 0x3de   :  { %v556_v46 = vsel %vm359_vm4, %v554_v44, -inf }
 0x3df   :  { %557 = vmax.xlane.f32.xlu0 %v556_v46 }
 0x466   :  { %v561_v47 = vpop.xlane.xlu1 %560 }
 0x467   :  { %v563_v48 = vsub.f32 %v555_v42, %v561_v47 }
 0x468   :  { %v558_v49 = vpop.xlane.xlu0 %557 }
 0x469   :  { %v562_v50 = vsub.f32 %v554_v44, %v558_v49  ;;  %v566_v51 = vmul.f32 1.442695, %v563_v48 }
 0x46b   :  { %v564_v52 = vmul.f32 1.442695, %v562_v50 }
 0x46d   :  { %802 = vpow2.f32 %v564_v52 }
 0x46e   :  { %804 = vpow2.f32 %v566_v51 }
 0x47a   :  { %v803_v53 = vpop.eup %802 }
 0x47b   :  { %v568_v54 = vsel %vm359_vm4, %v803_v53, 0.0  ;;  %v805_v55 = vpop.eup %804 }
 0x47c   :  { %569 = vadd.xlane.f32.xlu0 %v568_v54  ;;  %v571_v56 = vsel %vm359_vm4, %v805_v55, 0.0 }
 0x480   :  { %572 = vadd.xlane.f32.xlu0 %v571_v56 }
 0x505   :  { %v570_v57 = vpop.xlane.xlu0 %569 }
 0x506   :  { %806 = vrcp.f32 %v570_v57 }
 0x509   :  { %v573_v58 = vpop.xlane.xlu0 %572 }
 0x50a   :  { %808 = vrcp.f32 %v573_v58 }
 0x513   :  { %v807_v59 = vpop.eup %806 }
 0x514   :  { %v576_v60 = vmul.f32 %v807_v59, %v803_v53 }
 0x516   :  { %781 = vmatprep.mubr.msk.f32.mxu1 %vm359_vm4, %v576_v60 }
 0x517   :  { %v809_v61 = vpop.eup %808 }
 0x518   :  { %v577_v62 = vmul.f32 %v809_v61, %v805_v55 }
 0x51a   :  { %782 = vmatmul.mubr.msk.f32.vlgmr.msra.gmra.mxu1 %vm359_vm4, %v577_v62 }
 0x5da   :  { %v783_v63 = vpop.f32.mrf.mxu1 }
 0x5db   :  { %665 = vrot.lane.b32.xlu1 %v783_v63, %s946_s4 }
 0x5dc   :  { %v652_v0 = vpop.f32.mrf.mxu1 }
 0x5dd   :  { %663 = vrot.lane.b32.xlu0 %v652_v0, %s946_s4 }
 0x64d   :  { %v666_v2 = vpop.permute.xlu1 %665 }
 0x64e   :  { %v670_v3 = vsel %vm269_vm3, %v769_v39, %v666_v2 }
 0x64f   :  { %v674_v5 = vadd.f32 %v672_v1, %v670_v3  ;;  %v664_v6 = vpop.permute.xlu0 %663 }
 0x650   :  { %v669_v7 = vsel %vm269_vm3, %v454_v40, %v664_v6 }
 0x651   :  { %v673_v8 = vadd.f32 %v671_v4, %v669_v7  ;;  %677 = vst.msk [vmem:[#allocation11 + $0x8] sm:$0xff] %vm675_vm5, %v674_v5 }
 0x653   :  { %676 = vst.msk [vmem:[#allocation11] sm:$0xff] %vm675_vm5, %v673_v8 }
 0x654   :  { %921 = shalt.err (!%p918_p1)
}
 0x655   :  { %689 = dma.vmem_to_hbm [thread:$0]  %s684_s18, 256, %s1049_s5, [#allocation4], %s940_s23, %s940_s23, %s941_s24  }
 0x656   :  { %936 = dma.done.wait [#allocation4], 256  }
 0x657   :  { %937 = vsyncadd [#allocation4], 4294967040 }
 0x658   :  { %693 = vsyncpa [#allocation3], 1 }
 0x659   :  { %694 = vsyncpa [#allocation6], 1 }
 0x65a   :  { %695 = vsyncpa [#allocation9], 1 }
 0x65b   :  { %696 = vsyncpa [#allocation4], 1 }

</bundles_post_ra>
